<compile_context>
chip_gen: v7x
topology: tpu7x:2x2x1
jax: 0.10.0
libtpu: 0.0.40
codegen_flags: <defaults>
</compile_context>

<pallas_src>
import jax
import jax.numpy as jnp
from jax import lax
from jax.experimental import pallas as pl
from jax.experimental.pallas import tpu as pltpu

TYPES = ["m", "a", "d"]
DP = 128            # feature dim padded to full 128-lane width
ROW_TILE_CAP = 256  # cap on the output-row tile


def _round_up(x, m):
    return ((x + m - 1) // m) * m


def _row_tile(n):
    """Row tile: multiple of 8, capped; always divides the padded row count."""
    return min(ROW_TILE_CAP, _round_up(n, 8))


def _pad2d(a, rows, cols):
    out = jnp.zeros((rows, cols), a.dtype)
    return out.at[: a.shape[0], : a.shape[1]].set(a)


# ---------------------------------------------------------------------------
# Kernel A: per-neighbor-type feature transform  xt = relu(x @ W^T + b)
# (computed once per neighbor type, bf16 output for the adjacency matmul)
# ---------------------------------------------------------------------------
def _neigh_transform_kernel(x_ref, wt_ref, b_ref, out_ref):
    acc = jnp.dot(
        x_ref[...].astype(jnp.bfloat16), wt_ref[...],
        preferred_element_type=jnp.float32,
    ) + b_ref[...]
    out_ref[...] = jnp.maximum(acc, 0.0).astype(out_ref.dtype)


def neigh_transform(x_pad, w_t_bf16, b_row):
    n, d = x_pad.shape
    tile = _row_tile(n)
    return pl.pallas_call(
        _neigh_transform_kernel,
        out_shape=jax.ShapeDtypeStruct((n, d), jnp.bfloat16),
        grid=(n // tile,),
        in_specs=[
            pl.BlockSpec((tile, d), lambda i: (i, 0)),   # x row tile
            pl.BlockSpec((d, d), lambda i: (0, 0)),      # W^T (resident)
            pl.BlockSpec((1, d), lambda i: (0, 0)),      # bias (resident)
        ],
        out_specs=pl.BlockSpec((tile, d), lambda i: (i, 0)),
        compiler_params=pltpu.CompilerParams(
            dimension_semantics=("parallel",),
            vmem_limit_bytes=48 * 1024 * 1024,
        ),
    )(x_pad, w_t_bf16, b_row)


# ---------------------------------------------------------------------------
# Kernel B: one Het_Agg output-row tile (adjacency matmuls + attention + final)
# ---------------------------------------------------------------------------
def _het_agg_kernel(
    xt0_ref, xt1_ref, xt2_ref,    # transformed neighbor features (Nj, DP) bf16, resident
    a0_ref, a1_ref, a2_ref,       # degree-normalized adjacency row tiles (T, Nj) bf16
    xnode_ref,                    # this type's own features, row tile (T, DP) f32
    ua_ref, ux_ref,               # attention vector halves, (1, DP) f32
    wlx_ref, wlc_ref, bl_ref,     # final linear (pre-transposed, padded): bf16, bf16, f32
    out_ref,                      # (T, DP) f32
):
    def aggregate(adj_ref, xt_ref):
        # mean-by-source is already folded into adj (rows pre-divided by degree)
        return jnp.dot(adj_ref[...], xt_ref[...], preferred_element_type=jnp.float32)

    m_aggr = aggregate(a0_ref, xt0_ref)
    a_aggr = aggregate(a1_ref, xt1_ref)
    d_aggr = aggregate(a2_ref, xt2_ref)

    xnode = xnode_ref[...]
    u_a = ua_ref[...]
    u_x = ux_ref[...]

    # attention mat-vec as VPU multiply + lane reduction (MXU stays free)
    x_part = jnp.sum(xnode * u_x, axis=-1, keepdims=True)

    def score(aggr):
        s = jnp.sum(aggr * u_a, axis=-1, keepdims=True) + x_part
        s = jnp.where(s >= 0.0, s, 0.01 * s)   # leaky_relu, slope 0.01
        return jnp.exp(s)

    m_s = score(m_aggr)
    a_s = score(a_aggr)
    d_s = score(d_aggr)
    inv = pl.reciprocal(m_s + a_s + d_s, approx=True)
    combined = (m_s * inv) * m_aggr + (a_s * inv) * a_aggr + (d_s * inv) * d_aggr

    # final = L2_normalize(relu(cat(xnode, combined) @ Wl^T + bl)) -- cat split
    fin = (
        jnp.dot(xnode.astype(jnp.bfloat16), wlx_ref[...],
                preferred_element_type=jnp.float32)
        + jnp.dot(combined.astype(jnp.bfloat16), wlc_ref[...],
                  preferred_element_type=jnp.float32)
        + bl_ref[...]
    )
    fin = jnp.maximum(fin, 0.0)
    sumsq = jnp.sum(fin * fin, axis=-1, keepdims=True)
    out_ref[...] = fin * lax.rsqrt(jnp.maximum(sumsq, 1e-24))


def het_agg_forward(xt_list, adj_list, x_node_pad, p):
    n, d = x_node_pad.shape
    tile = _row_tile(n)
    in_specs = (
        [pl.BlockSpec(xt.shape, lambda i: (0, 0)) for xt in xt_list]                 # resident
        + [pl.BlockSpec((tile, adj.shape[1]), lambda i: (i, 0)) for adj in adj_list]  # row tiles
        + [
            pl.BlockSpec((tile, d), lambda i: (i, 0)),   # x_node tile
            pl.BlockSpec((1, d), lambda i: (0, 0)),      # u_a
            pl.BlockSpec((1, d), lambda i: (0, 0)),      # u_x
            pl.BlockSpec((d, d), lambda i: (0, 0)),      # Wl[:, :D]^T
            pl.BlockSpec((d, d), lambda i: (0, 0)),      # Wl[:, D:]^T
            pl.BlockSpec((1, d), lambda i: (0, 0)),      # bl
        ]
    )
    return pl.pallas_call(
        _het_agg_kernel,
        out_shape=jax.ShapeDtypeStruct((n, d), jnp.float32),
        grid=(n // tile,),
        in_specs=in_specs,
        out_specs=pl.BlockSpec((tile, d), lambda i: (i, 0)),
        compiler_params=pltpu.CompilerParams(
            dimension_semantics=("parallel",),
            vmem_limit_bytes=48 * 1024 * 1024,
        ),
    )(
        xt_list[0], xt_list[1], xt_list[2],
        adj_list[0], adj_list[1], adj_list[2],
        x_node_pad,
        p["u_a"], p["u_x"], p["wlx_t"], p["wlc_t"], p["bl_row"],
    )


# ---------------------------------------------------------------------------
# Glue: adjacency construction (index_add_/bincount analog) + param packing.
# ---------------------------------------------------------------------------
def build_adjacency_norm(edge_index, np_src, np_tgt):
    """Dense degree-normalized adjacency: A[s, t] = (#edges s->t) / max(deg(s), 1).

    bf16 is exact for the small-integer counts; after the degree divide the
    relative rounding error is < 0.4%, inside the test tolerance.
    TODO(synk): for large sparse graphs replace the dense adjacency with a
    scalar-prefetch edge-gather design (work ∝ |E| instead of N*N_src).
    """
    src, tgt = edge_index[0], edge_index[1]
    adj = jnp.zeros((np_src, np_tgt), jnp.float32).at[src, tgt].add(1.0)
    cnt = jnp.maximum(jnp.zeros((np_src,), jnp.float32).at[src].add(1.0), 1.0)
    return (adj / cnt[:, None]).astype(jnp.bfloat16)


def prepare_params(p, d):
    """Pad / transpose / split parameters once (kernels only do matmul + VPU)."""
    out = {}
    for i in range(3):
        out[f"W{i}t"] = _pad2d(p[f"W{i}"].T, DP, DP).astype(jnp.bfloat16)
        out[f"b{i}"] = _pad2d(p[f"b{i}"].reshape(1, d), 1, DP)
    u = p["u"]
    out["u_a"] = _pad2d(u[:d].reshape(1, d), 1, DP)   # multiplies the aggregation
    out["u_x"] = _pad2d(u[d:].reshape(1, d), 1, DP)   # multiplies x_node
    wl = p["Wl"]
    out["wlx_t"] = _pad2d(wl[:, :d].T, DP, DP).astype(jnp.bfloat16)
    out["wlc_t"] = _pad2d(wl[:, d:].T, DP, DP).astype(jnp.bfloat16)
    out["bl_row"] = _pad2d(p["bl"].reshape(1, d), 1, DP)
    return out


def het_neten_forward(x_list, edge_indices, params):
    """Het_NetEn.forward: sequential in-place-style updates of x_list."""
    ns = [x.shape[0] for x in x_list]
    d = x_list[0].shape[1]
    nps = [_round_up(n, _row_tile(n)) for n in ns]
    # pad rows to the tile multiple and feature dim to the 128-lane width
    x_pad = [_pad2d(x, nps[i], DP) for i, x in enumerate(x_list)]
    p_pad = {t: prepare_params(params[t], d) for t in TYPES}

    # TODO(synk): the three Het_Agg calls are sequentially data-dependent
    # (type i's update feeds type i+1's aggregation), so they stay as
    # separate pallas_calls instead of one fused kernel.
    for i, s in enumerate(TYPES):
        p = p_pad[s]
        xt_list = [
            neigh_transform(x_pad[j], p[f"W{j}t"], p[f"b{j}"]) for j in range(3)
        ]
        adj_list = [
            build_adjacency_norm(edge_indices[(s, t)], nps[i], nps[j])
            for j, t in enumerate(TYPES)
        ]
        x_pad[i] = het_agg_forward(xt_list, adj_list, x_pad[i], p)
    return [x_pad[i][: ns[i], :d] for i in range(3)]


# ---------------------------------------------------------------------------
# Deterministic parameter init (shapes match the nn.Module __init__).
# ---------------------------------------------------------------------------
def init_het_agg_params(key, d):
    ks = jax.random.split(key, 9)
    p = {}
    for i in range(3):
        p[f"W{i}"] = 0.1 * jax.random.normal(ks[2 * i], (d, d), jnp.float32)
        p[f"b{i}"] = 0.1 * jax.random.normal(ks[2 * i + 1], (d,), jnp.float32)
    p["u"] = 0.1 * jax.random.normal(ks[6], (2 * d, 1), jnp.float32)
    p["Wl"] = 0.1 * jax.random.normal(ks[7], (d, 2 * d), jnp.float32)
    p["bl"] = 0.1 * jax.random.normal(ks[8], (d,), jnp.float32)
    return p


# ---------------------------------------------------------------------------
# Pure-JAX f32 reference (mirrors the PyTorch code with real gather/scatter).
# ---------------------------------------------------------------------------
def _mm(a, b):
    return jnp.dot(a, b, precision=lax.Precision.HIGHEST)


def _ref_neigh_agg(x, edge_index, num_node, w, b):
    src, tgt = edge_index[0], edge_index[1]
    xt = jax.nn.relu(_mm(x, w.T) + b)
    aggr = jnp.zeros((num_node, x.shape[1]), jnp.float32).at[src].add(xt[tgt])
    cnt = jnp.maximum(jnp.zeros((num_node,), jnp.float32).at[src].add(1.0), 1.0)
    return aggr / cnt[:, None]


def _ref_het_agg(x_list, edges_list, x_node, num_node, p):
    m = _ref_neigh_agg(x_list[0], edges_list[0], num_node, p["W0"], p["b0"])
    a = _ref_neigh_agg(x_list[1], edges_list[1], num_node, p["W1"], p["b1"])
    d = _ref_neigh_agg(x_list[2], edges_list[2], num_node, p["W2"], p["b2"])
    leaky = lambda v: jnp.where(v >= 0, v, 0.01 * v)
    m_s = jnp.exp(leaky(_mm(jnp.concatenate([m, x_node], -1), p["u"])))
    a_s = jnp.exp(leaky(_mm(jnp.concatenate([a, x_node], -1), p["u"])))
    d_s = jnp.exp(leaky(_mm(jnp.concatenate([d, x_node], -1), p["u"])))
    ssum = m_s + a_s + d_s
    comb = (m_s / ssum) * m + (a_s / ssum) * a + (d_s / ssum) * d
    fin = jax.nn.relu(_mm(jnp.concatenate([x_node, comb], -1), p["Wl"].T) + p["bl"])
    norm = jnp.sqrt(jnp.sum(fin * fin, -1, keepdims=True))
    return fin / jnp.maximum(norm, 1e-12)


def _ref_het_neten(x_list, edge_indices, params):
    x_cur = list(x_list)
    for i, s in enumerate(TYPES):
        edges = [edge_indices[(s, t)] for t in TYPES]
        x_cur[i] = _ref_het_agg(x_cur, edges, x_cur[i], x_cur[i].shape[0], params[s])
    return x_cur


# ---------------------------------------------------------------------------
if __name__ == "__main__":
    key = jax.random.PRNGKey(0)
    D = 32
    sizes = {"m": 16, "a": 12, "d": 8}
    n_edges = 24

    k_feat, k_edge, k_param = jax.random.split(key, 3)

    fkeys = jax.random.split(k_feat, 3)
    x_list = [
        jax.random.normal(fkeys[i], (sizes[t], D), jnp.float32)
        for i, t in enumerate(TYPES)
    ]

    edge_indices = {}
    ekeys = jax.random.split(k_edge, 18)
    idx = 0
    for s in TYPES:
        for t in TYPES:
            src = jax.random.randint(ekeys[idx], (n_edges,), 0, sizes[s])
            tgt = jax.random.randint(ekeys[idx + 1], (n_edges,), 0, sizes[t])
            edge_indices[(s, t)] = jnp.stack([src, tgt])
            idx += 2

    pkeys = jax.random.split(k_param, 3)
    params = {t: init_het_agg_params(pkeys[i], D) for i, t in enumerate(TYPES)}

    out_list = het_neten_forward(x_list, edge_indices, params)
    out_list = [jax.block_until_ready(o) for o in out_list]

    ref_list = _ref_het_neten(x_list, edge_indices, params)
    max_err = max(
        float(jnp.max(jnp.abs(o - r))) for o, r in zip(out_list, ref_list)
    )
    assert max_err < 2e-2, f"mismatch vs reference: {max_err}"

    print("KERNEL_OK")
</pallas_src>

<mosaic_0001>
module attributes {stable_mosaic.version = 11 : i64} {
  func.func @_neigh_transform_kernel(%arg0: i32, %arg1: memref<16x128xf32, #tpu.memory_space<vmem>>, %arg2: memref<128x128xbf16, #tpu.memory_space<vmem>>, %arg3: memref<1x128xf32, #tpu.memory_space<vmem>>, %arg4: memref<16x128xbf16, #tpu.memory_space<vmem>>) attributes {dimension_semantics = [#tpu.dimension_semantics<parallel>], iteration_bounds = array<i64: 1>, scalar_prefetch = 0 : i64, scratch_operands = 0 : i64, tpu.core_type = #tpu.core_type<tc>, window_params = [{transform_indices = @transform_0, window_bounds = array<i64: 16, 128>}, {pipeline_mode = #tpu.pipeline_mode<synchronous>, transform_indices = @transform_1, window_bounds = array<i64: 128, 128>}, {pipeline_mode = #tpu.pipeline_mode<synchronous>, transform_indices = @transform_2, window_bounds = array<i64: 1, 128>}, {transform_indices = @transform_3, window_bounds = array<i64: 16, 128>}]} {
    %c0 = arith.constant 0 : index
    %c0_0 = arith.constant 0 : index
    %0 = vector.load %arg1[%c0, %c0_0] : memref<16x128xf32, #tpu.memory_space<vmem>>, vector<16x128xf32>
    %1 = arith.truncf %0 : vector<16x128xf32> to vector<16x128xbf16>
    %c0_1 = arith.constant 0 : index
    %c0_2 = arith.constant 0 : index
    %2 = vector.load %arg2[%c0_1, %c0_2] : memref<128x128xbf16, #tpu.memory_space<vmem>>, vector<128x128xbf16>
    %cst = arith.constant dense<0.000000e+00> : vector<16x128xf32>
    %3 = tpu.matmul %1, %2, %cst {dimension_numbers = #tpu.dot_dimension_numbers<[1], [0], [0], [1], [0, 0, 1, 1], [], []>} : vector<16x128xbf16>, vector<128x128xbf16>, vector<16x128xf32> -> vector<16x128xf32>
    %c0_3 = arith.constant 0 : index
    %c0_4 = arith.constant 0 : index
    %4 = vector.load %arg3[%c0_3, %c0_4] : memref<1x128xf32, #tpu.memory_space<vmem>>, vector<1x128xf32>
    %5 = vector.broadcast %4 : vector<1x128xf32> to vector<16x128xf32>
    %6 = arith.addf %3, %5 : vector<16x128xf32>
    %cst_5 = arith.constant 0.000000e+00 : f32
    %7 = vector.broadcast %cst_5 : f32 to vector<16x128xf32>
    %8 = arith.maximumf %6, %7 : vector<16x128xf32>
    %9 = arith.truncf %8 : vector<16x128xf32> to vector<16x128xbf16>
    %c0_6 = arith.constant 0 : index
    %c0_7 = arith.constant 0 : index
    %10 = vector.load %arg4[%c0_6, %c0_7] : memref<16x128xbf16, #tpu.memory_space<vmem>>, vector<16x128xbf16>
    tpu.vector_store %arg4[%c0_6, %c0_7], %9 {strides = array<i32>} : memref<16x128xbf16, #tpu.memory_space<vmem>>, vector<16x128xbf16>,
    return
  }
  func.func @transform_0(%arg0: i32) -> (i32, i32) {
    %c0_i32 = arith.constant 0 : i32
    %c0_i32_0 = arith.constant 0 : i32
    return %arg0, %c0_i32 : i32, i32
  }
  func.func @transform_1(%arg0: i32) -> (i32, i32) {
    %c0_i32 = arith.constant 0 : i32
    %c0_i32_0 = arith.constant 0 : i32
    %c0_i32_1 = arith.constant 0 : i32
    return %c0_i32, %c0_i32_0 : i32, i32
  }
  func.func @transform_2(%arg0: i32) -> (i32, i32) {
    %c0_i32 = arith.constant 0 : i32
    %c0_i32_0 = arith.constant 0 : i32
    %c0_i32_1 = arith.constant 0 : i32
    return %c0_i32, %c0_i32_0 : i32, i32
  }
  func.func @transform_3(%arg0: i32) -> (i32, i32) {
    %c0_i32 = arith.constant 0 : i32
    %c0_i32_0 = arith.constant 0 : i32
    return %arg0, %c0_i32 : i32, i32
  }
}

</mosaic_0001>

<bundles_post_ra>
// kernel: tpu_custom_call.1
= control target key start
LH: loop header
LB: loop body
LE: loop exit
PB: predicated region body
PF: predicated region fallthrough
CT: control target
= control target key end

     0   :  { %8 = vsyncpa [#allocation3], 0  ;;  %s399_s0 = inlined_call_operand.hbm [shape: f32[16,128], index: 0, kind: input, shape index: {}]   ;;  %s400_s1 = inlined_call_operand.hbm [shape: bf16[128,128], index: 1, kind: input, shape index: {}]   ;;  %s401_s2 = inlined_call_operand.vmem [shape: f32[1,128], index: 2, kind: input, shape index: {}]   ;;  %s402_s3 = inlined_call_operand.hbm [shape: bf16[16,128], index: 3, kind: output, shape index: {}]  }
   0x1   :  { %9 = vsyncpa [#allocation6], 0 }
   0x2   :  { %10 = vsyncpa [#allocation4], 0  ;;  %s325_s12 = smov [#allocation2]   ;;  %s253_s16 = scalar_lea.hbm %s399_s0, 256 }
   0x3   :  { %s16_s13 = sshll.u32 %s325_s12, 4  ;;  %p254_p0 = scmp.ne.s32.totalorder %s399_s0, %s253_s16  ;;  %s17_s13 = int_to_ptr.vmem [resolvable:$true] %s16_s13 }
   0x4   :  { %p257_p1 = scmp.lt.u32.totalorder %s253_s16, %s399_s0 }
   0x6   :  { %p259_p2 = pnand %p257_p1, %p254_p0 }
   0x8   :  { %262 = shalt.err (!%p259_p2)
}
   0x9   :  { %s263_s21 = scalar_lea.vmem %s17_s13, 256  ;;  %p268_p4 = scmp.lt.s32.totalorder %s17_s13, %s17_s13 }
   0xa   :  { %p264_p3 = scmp.ne.s32.totalorder %s17_s13, %s263_s21  ;;  %p269_p5 = scmp.lt.s32.totalorder %s263_s21, %s263_s21 }
   0xc   :  { %p270_p6 = por %p269_p5, %p268_p4 }
   0xe   :  { %p271_p7 = pnand %p270_p6, %p264_p3 }
  0x10   :  { %274 = shalt.err (!%p271_p7)
}
  0x11   :  { %s326_s22 = smov 128   ;;  %s327_s23 = smov 8  }
  0x12   :  { %22 = dma.hbm_to_vmem [thread:$0]  %s399_s0, 256, %s17_s13, [#allocation3], %s326_s22, %s326_s22, %s327_s23  }
  0x13   :  { %s328_s26 = smov [#allocation5]   ;;  %s275_s30 = scalar_lea.hbm %s400_s1, 1024 }
  0x14   :  { %s28_s27 = sshll.u32 %s328_s26, 4  ;;  %p276_p8 = scmp.ne.s32.totalorder %s400_s1, %s275_s30  ;;  %s29_s27 = int_to_ptr.vmem [resolvable:$true] %s28_s27 }
  0x15   :  { %p279_p9 = scmp.lt.u32.totalorder %s275_s30, %s400_s1 }
  0x17   :  { %p281_p10 = pnand %p279_p9, %p276_p8 }
  0x19   :  { %284 = shalt.err (!%p281_p10)
}
  0x1a   :  { %s285_s8 = scalar_lea.vmem %s29_s27, 1024  ;;  %p290_p12 = scmp.lt.s32.totalorder %s29_s27, %s29_s27 }
  0x1b   :  { %p286_p11 = scmp.ne.s32.totalorder %s29_s27, %s285_s8  ;;  %p291_p13 = scmp.lt.s32.totalorder %s285_s8, %s285_s8 }
  0x1d   :  { %p292_p0 = por %p291_p13, %p290_p12 }
  0x1f   :  { %p293_p1 = pnand %p292_p0, %p286_p11 }
  0x21   :  { %296 = shalt.err (!%p293_p1)
}
  0x22   :  { %s329_s0 = smov 64   ;;  %s330_s9 = smov 4  }
  0x23   :  { %34 = dma.hbm_to_vmem [thread:$0]  %s400_s1, 1024, %s29_s27, [#allocation6], %s329_s0, %s329_s0, %s330_s9  }
  0x24   :  { %319 = dma.done.wait [#allocation3], 256  }
  0x25   :  { %320 = vsyncadd [#allocation3], 4294967040 }
  0x26   :  { %321 = dma.done.wait [#allocation6], 1024  }
  0x27   :  { %322 = vsyncadd [#allocation6], 4294966272  ;;  %v331_v0 = vmov 0.0   ;;  %vm332_vm0 = vmmov 0   ;;  %v245_v1 = vld [vmem:[#allocation5] sm:$0xff]   ;;  %v246_v2 = vld [vmem:[#allocation5 + $0x8] sm:$0xff]  }
  0x28   :  { %216 = vmatprep.subr.bf16.mxu0 %v331_v0  ;;  %232 = vmatprep.mubr.msk.bf16.mxu0 %vm332_vm0, %v331_v0  ;;  %v247_v3 = vld [vmem:[#allocation5 + $0x10] sm:$0xff]   ;;  %v248_v4 = vld [vmem:[#allocation5 + $0x18] sm:$0xff]   ;;  %v249_v5 = vld [vmem:[#allocation5 + $0x20] sm:$0xff]   ;;  %s333_s13 = smov [#allocation7]  }
  0x29   :  { %217 = vmatpush3.bf16.msra.mxu0 %v245_v1  ;;  %v250_v6 = vld [vmem:[#allocation5 + $0x28] sm:$0xff]   ;;  %v251_v7 = vld [vmem:[#allocation5 + $0x30] sm:$0xff]   ;;  %v252_v8 = vld [vmem:[#allocation5 + $0x38] sm:$0xff]   ;;  %s176_s14 = sshll.u32 %s333_s13, 4  ;;  %s177_s14 = int_to_ptr.vmem [resolvable:$true] %s176_s14 }
  0x2a   :  { %218 = vmatprep.subr.bf16.mxu0 %v331_v0  ;;  %v44_v9 = vld [vmem:[#allocation2] sm:$0xff]  ;;  %v45_v10 = vld [vmem:[#allocation2 + $0x8] sm:$0xff]  ;;  %s297_s15 = scalar_lea.vmem %s177_s14, 128  ;;  %p302_p3 = scmp.lt.s32.totalorder %s177_s14, %s177_s14 }
  0x2b   :  { %v46_v11 = vpack.c.bf16 %v45_v10, %v44_v9  ;;  %v189_v12 = vld [vmem:[%s401_s2] ss:$0 sm:$0xff]  ;;  %p298_p2 = scmp.ne.s32.totalorder %s177_s14, %s297_s15  ;;  %p303_p4 = scmp.lt.s32.totalorder %s297_s15, %s297_s15 }
  0x2d   :  { %219 = vmatpush3.bf16.msra.mxu0 %v246_v2  ;;  %p304_p5 = por %p303_p4, %p302_p3 }
  0x2e   :  { %220 = vmatprep.subr.bf16.mxu0 %v331_v0 }
  0x2f   :  { %p305_p6 = pnand %p304_p5, %p298_p2 }
  0x31   :  { %221 = vmatpush3.bf16.msra.mxu0 %v247_v3 }
  0x32   :  { %222 = vmatprep.subr.bf16.mxu0 %v331_v0 }
  0x35   :  { %223 = vmatpush3.bf16.msra.mxu0 %v248_v4 }
  0x36   :  { %224 = vmatprep.subr.bf16.mxu0 %v331_v0 }
  0x39   :  { %225 = vmatpush3.bf16.msra.mxu0 %v249_v5 }
  0x3a   :  { %226 = vmatprep.subr.bf16.mxu0 %v331_v0 }
  0x3d   :  { %227 = vmatpush3.bf16.msra.mxu0 %v250_v6 }
  0x3e   :  { %228 = vmatprep.subr.bf16.mxu0 %v331_v0 }
  0x41   :  { %229 = vmatpush3.bf16.msra.mxu0 %v251_v7 }
  0x42   :  { %230 = vmatprep.subr.bf16.mxu0 %v331_v0 }
  0x45   :  { %231 = vmatpush3.bf16.msra.mxu0 %v252_v8 }
  0x48   :  { %233 = vmatmul.mubr.bf16.vlgmr.msra.gmra.mrb[0].mxu0 %v46_v11 }
 0x11b   :  { %v152_v13 = vpop.f32.mrb[0].mxu0 }
 0x11c   :  { %v153_v14 = vadd.f32 %v189_v12, %v152_v13  ;;  %v234_v15 = vpop.f32.mrb[1].mxu0 }
 0x11d   :  { %v155_v16 = vpop.f32.mrb[2].mxu0 }
 0x11e   :  { %v156_v17 = vadd.f32 %v189_v12, %v155_v16  ;;  %v235_v18 = vpop.f32.mrb[3].mxu0  ;;  %v159_v19 = vmax.f32 %v153_v14, 0.0 }
 0x120   :  { %v160_v20 = vmax.f32 %v156_v17, 0.0 }
 0x122   :  { %v205_v21 = vpack.c.bf16 %v160_v20, %v159_v19 }
 0x124   :  { %206 = vst [vmem:[#allocation7] sm:$0xff] %v205_v21  }
 0x125   :  { %308 = shalt.err (!%p305_p6)
}
 0x126   :  { %s309_s17 = scalar_lea.hbm %s402_s3, 128 }
 0x127   :  { %p310_p7 = scmp.ne.s32.totalorder %s402_s3, %s309_s17  ;;  %p313_p8 = scmp.lt.u32.totalorder %s309_s17, %s402_s3 }
 0x129   :  { %p315_p9 = pnand %p313_p8, %p310_p7 }
 0x12b   :  { %318 = shalt.err (!%p315_p9)
}
 0x12c   :  { %182 = dma.vmem_to_hbm [thread:$0]  %s177_s14, 128, %s402_s3, [#allocation4], %s329_s0, %s329_s0, %s330_s9  }
 0x12d   :  { %323 = dma.done.wait [#allocation4], 128  }
 0x12e   :  { %324 = vsyncadd [#allocation4], 4294967168 }
 0x12f   :  { %186 = vsyncpa [#allocation3], 1 }
 0x130   :  { %187 = vsyncpa [#allocation6], 1 }
 0x131   :  { %188 = vsyncpa [#allocation4], 1 }

</bundles_post_ra>
